<compile_context>
chip_gen: v5e
topology: v5e:2x2
jax: 0.10.0
libtpu: 0.0.40
codegen_flags: <defaults>
</compile_context>

<pallas_src>
import jax
import jax.numpy as jnp
from jax.experimental import pallas as pl
from jax.experimental.pallas import tpu as pltpu

# ---------------- configuration (small, consistent with the module) ----------
IMAGE = 16
PATCH = 4
CHANNELS = 3
DIM = 64
DEPTH = 2
HEADS = 4
DIM_HEAD = 16                         # HEADS * DIM_HEAD == DIM
INNER = HEADS * DIM_HEAD              # 64
MLP_DIM = 128
NUM_CLASSES = 10
PAD_CLASSES = 128                     # lane-dense classifier slab
NUM_PATCHES = (IMAGE // PATCH) ** 2   # 16
SEQ = NUM_PATCHES + 1                 # 17 (cls token)
PATCH_DIM = CHANNELS * PATCH * PATCH  # 48
LN_EPS = 1e-5
ATTN_SCALE = DIM_HEAD ** -0.5


# ---------------- in-kernel (value-level) helpers -----------------------------
def _layernorm(x, g, b):
    mu = jnp.mean(x, axis=-1, keepdims=True)
    xc = x - mu
    var = jnp.mean(xc * xc, axis=-1, keepdims=True)
    return xc * jax.lax.rsqrt(var + LN_EPS) * g + b


def _gelu_tanh(x):
    # tanh approximation of nn.GELU() (exact-erf); agrees to ~1e-3, keeps the
    # transcendental on the EUP slot instead of a long VALU polynomial.
    c = 0.7978845608028654  # sqrt(2/pi)
    return 0.5 * x * (1.0 + jnp.tanh(c * (x + 0.044715 * x * x * x)))


# ---------------- Pallas kernels ----------------------------------------------
def channel_selection_kernel(x_ref, idx_ref, o_ref):
    # the spec module: output = input_tensor * indexes   (indexes broadcast on D)
    o_ref[...] = x_ref[...] * idx_ref[...]


def embed_kernel(p_ref, w_ref, b_ref, o_ref):
    # patch embedding Linear(patch_dim, dim)
    o_ref[...] = jnp.dot(p_ref[...], w_ref[...],
                         preferred_element_type=jnp.float32) + b_ref[...]


def block_kernel(x_ref, ln1g, ln1b, wqkv, sel, wo, bo, ln2g, ln2b,
                 w1, mb1, w2, mb2, o_ref, qkv_sc):
    # One full transformer block for one batch element (block = (1, SEQ, DIM)).
    x = x_ref[0]                                               # (T, D)

    # ---- attention sub-block: LN1 -> fused QKV (+ channel_selection) ---------
    xn = _layernorm(x, ln1g[...], ln1b[...])
    qkv_sc[...] = jnp.dot(xn, wqkv[...],
                          preferred_element_type=jnp.float32) * sel[...]

    attn_acc = jnp.zeros_like(x)                               # (T, D)
    for h in range(HEADS):                                     # static unroll
        q = qkv_sc[:, h * DIM_HEAD:(h + 1) * DIM_HEAD]                     # (T, Dh)
        k = qkv_sc[:, INNER + h * DIM_HEAD:INNER + (h + 1) * DIM_HEAD]
        v = qkv_sc[:, 2 * INNER + h * DIM_HEAD:2 * INNER + (h + 1) * DIM_HEAD]
        dots = jax.lax.dot_general(q, k, (((1,), (1,)), ((), ())),
                                   preferred_element_type=jnp.float32) * ATTN_SCALE
        dots = dots - jnp.max(dots, axis=-1, keepdims=True)
        e = jnp.exp(dots)
        p = e * pl.reciprocal(jnp.sum(e, axis=-1, keepdims=True), approx=True)
        oh = jnp.dot(p, v, preferred_element_type=jnp.float32)            # (T, Dh)
        # concat_h(oh) @ Wo  ==  sum_h oh @ Wo[h*Dh:(h+1)*Dh, :]
        attn_acc = attn_acc + jnp.dot(oh, wo[h * DIM_HEAD:(h + 1) * DIM_HEAD, :],
                                      preferred_element_type=jnp.float32)

    res1 = x + attn_acc + bo[...]                              # fused residual

    # ---- MLP sub-block: LN2 -> Linear -> GELU -> Linear -> +residual ---------
    yn = _layernorm(res1, ln2g[...], ln2b[...])
    hid = jnp.dot(yn, w1[...], preferred_element_type=jnp.float32) + mb1[...]
    hid = _gelu_tanh(hid)
    ff = jnp.dot(hid, w2[...], preferred_element_type=jnp.float32) + mb2[...]
    o_ref[0] = res1 + ff                                       # fused residual


def head_kernel(x_ref, g_ref, b_ref, w_ref, bias_ref, o_ref):
    xn = _layernorm(x_ref[...], g_ref[...], b_ref[...])
    o_ref[...] = jnp.dot(xn, w_ref[...],
                         preferred_element_type=jnp.float32) + bias_ref[...]


# ---------------- wrappers ------------------------------------------------------
def channel_selection_op(x, indexes):
    """Standalone channel_selection: x (B, N+1, D) * indexes (D,)."""
    b, t, d = x.shape
    return pl.pallas_call(
        channel_selection_kernel,
        out_shape=jax.ShapeDtypeStruct((b, t, d), x.dtype),
    )(x, indexes.reshape(1, 1, d).astype(x.dtype))


def patch_embed(patches, w, b):
    m = patches.shape[0]
    return pl.pallas_call(
        embed_kernel,
        out_shape=jax.ShapeDtypeStruct((m, DIM), jnp.float32),
    )(patches, w, b)


def transformer_block(layer, x):
    b, t, d = x.shape

    def full(shape):
        n = len(shape)
        return pl.BlockSpec(shape, lambda i, n=n: (0,) * n)

    act_spec = pl.BlockSpec((1, t, d), lambda i: (i, 0, 0))
    return pl.pallas_call(
        block_kernel,
        grid=(b,),
        in_specs=[
            act_spec,
            full((1, DIM)), full((1, DIM)),                  # ln1 gamma/beta
            full((DIM, 3 * INNER)), full((1, 3 * INNER)),    # fused wqkv, sel
            full((INNER, DIM)), full((1, DIM)),              # wo, bo
            full((1, DIM)), full((1, DIM)),                  # ln2 gamma/beta
            full((DIM, MLP_DIM)), full((1, MLP_DIM)),        # w1, b1
            full((MLP_DIM, DIM)), full((1, DIM)),            # w2, b2
        ],
        out_specs=act_spec,
        out_shape=jax.ShapeDtypeStruct((b, t, d), jnp.float32),
        scratch_shapes=[pltpu.VMEM((t, 3 * INNER), jnp.float32)],
        compiler_params=pltpu.CompilerParams(dimension_semantics=("parallel",)),
    )(x, layer['ln1_g'], layer['ln1_b'], layer['wqkv'], layer['sel3'],
      layer['wo'], layer['bo'], layer['ln2_g'], layer['ln2_b'],
      layer['w1'], layer['b1'], layer['w2'], layer['b2'])


def mlp_head(x_cls, g, b, w_pad, b_pad):
    m = x_cls.shape[0]
    out = pl.pallas_call(
        head_kernel,
        out_shape=jax.ShapeDtypeStruct((m, PAD_CLASSES), jnp.float32),
    )(x_cls, g, b, w_pad, b_pad)
    return out[:, :NUM_CLASSES]


# ---------------- model (forward) ------------------------------------------------
def vit_forward(params, img):
    b, c, hh, ww = img.shape
    p = PATCH
    h, w = hh // p, ww // p
    # one-time glue: 'b c (h p1) (w p2) -> b (h w) (p1 p2 c)'
    patches = img.reshape(b, c, h, p, w, p).transpose(0, 2, 4, 3, 5, 1)
    patches = patches.reshape(b * h * w, p * p * c)

    emb = patch_embed(patches, params['patch_w'], params['patch_b'])
    emb = emb.reshape(b, h * w, DIM)

    cls = jnp.broadcast_to(params['cls'], (b, 1, DIM))
    x = jnp.concatenate([cls, emb], axis=1) + params['pos_emb'][:, :h * w + 1]
    # emb dropout p=0 => identity

    for layer in params['layers']:
        x = transformer_block(layer, x)       # residuals fused inside

    cls_tok = x[:, 0]                         # pool == 'cls'
    return mlp_head(cls_tok, params['head_ln_g'], params['head_ln_b'],
                    params['head_w_pad'], params['head_b_pad'])


# ---------------- deterministic parameter init -----------------------------------
def init_params(key):
    ks = iter(jax.random.split(key, 64))

    def nrm(shape, scale=0.02):
        return (scale * jax.random.normal(next(ks), shape)).astype(jnp.float32)

    head_w = nrm((DIM, NUM_CLASSES))
    params = dict(
        patch_w=nrm((PATCH_DIM, DIM)),
        patch_b=jnp.zeros((1, DIM), jnp.float32),
        pos_emb=jax.random.normal(next(ks), (1, SEQ, DIM), jnp.float32),
        cls=jax.random.normal(next(ks), (1, 1, DIM), jnp.float32),
        head_ln_g=jnp.ones((1, DIM), jnp.float32),
        head_ln_b=jnp.zeros((1, DIM), jnp.float32),
        head_w_pad=jnp.pad(head_w, ((0, 0), (0, PAD_CLASSES - NUM_CLASSES))),
        head_b_pad=jnp.zeros((1, PAD_CLASSES), jnp.float32),
        layers=[],
    )
    for _ in range(DEPTH):
        wq, wk, wv = nrm((DIM, INNER)), nrm((DIM, INNER)), nrm((DIM, INNER))
        sel = jnp.ones((INNER,), jnp.float32)     # channel_selection.indexes
        params['layers'].append(dict(
            ln1_g=jnp.ones((1, DIM), jnp.float32), ln1_b=jnp.zeros((1, DIM), jnp.float32),
            wqkv=jnp.concatenate([wq, wk, wv], axis=1),                  # (DIM, 192)
            sel3=jnp.concatenate([sel, sel, sel]).reshape(1, 3 * INNER),  # (1, 192)
            wo=nrm((INNER, DIM)), bo=jnp.zeros((1, DIM), jnp.float32),
            ln2_g=jnp.ones((1, DIM), jnp.float32), ln2_b=jnp.zeros((1, DIM), jnp.float32),
            w1=nrm((DIM, MLP_DIM)), b1=jnp.zeros((1, MLP_DIM), jnp.float32),
            w2=nrm((MLP_DIM, DIM)), b2=jnp.zeros((1, DIM), jnp.float32),
        ))
    return params


# ---------------- main -------------------------------------------------------------
if __name__ == "__main__":
    key = jax.random.PRNGKey(0)
    pkey, xkey, ckey, ikey = jax.random.split(key, 4)

    # 1) the spec module itself: channel_selection forward, input (B, N+1, D)
    x_cs = jax.random.normal(ckey, (2, SEQ, DIM), jnp.float32)
    indexes = (jax.random.uniform(ikey, (DIM,)) > 0.25).astype(jnp.float32)  # pruned mask
    out_cs = channel_selection_op(x_cs, indexes)
    jax.block_until_ready(out_cs)
    assert out_cs.shape == (2, SEQ, DIM)
    assert bool(jnp.allclose(out_cs, x_cs * indexes))

    # 2) fused ViT forward embedding channel_selection after the q/k/v linears
    params = init_params(pkey)
    img = jax.random.normal(xkey, (2, CHANNELS, IMAGE, IMAGE), jnp.float32)
    logits = jax.jit(vit_forward)(params, img)
    jax.block_until_ready(logits)
    assert logits.shape == (2, NUM_CLASSES)
    assert bool(jnp.all(jnp.isfinite(logits)))
    print("KERNEL_OK")
</pallas_src>

<mosaic_0001>
module attributes {stable_mosaic.version = 11 : i64} {
  func.func @channel_selection_kernel(%arg0: memref<2x17x64xf32, #tpu.memory_space<vmem>>, %arg1: memref<1x1x64xf32, #tpu.memory_space<vmem>>, %arg2: memref<2x17x64xf32, #tpu.memory_space<vmem>>) attributes {dimension_semantics = [], scalar_prefetch = 0 : i64, scratch_operands = 0 : i64, tpu.core_type = #tpu.core_type<tc>} {
    %c0 = arith.constant 0 : index
    %c0_0 = arith.constant 0 : index
    %c0_1 = arith.constant 0 : index
    %0 = vector.load %arg0[%c0, %c0_0, %c0_1] : memref<2x17x64xf32, #tpu.memory_space<vmem>>, vector<2x17x64xf32>
    %c0_2 = arith.constant 0 : index
    %c0_3 = arith.constant 0 : index
    %c0_4 = arith.constant 0 : index
    %1 = vector.load %arg1[%c0_2, %c0_3, %c0_4] : memref<1x1x64xf32, #tpu.memory_space<vmem>>, vector<1x1x64xf32>
    %2 = vector.broadcast %1 : vector<1x1x64xf32> to vector<2x17x64xf32>
    %3 = arith.mulf %0, %2 : vector<2x17x64xf32>
    %c0_5 = arith.constant 0 : index
    %c0_6 = arith.constant 0 : index
    %c0_7 = arith.constant 0 : index
    %4 = vector.load %arg2[%c0_5, %c0_6, %c0_7] : memref<2x17x64xf32, #tpu.memory_space<vmem>>, vector<2x17x64xf32>
    tpu.vector_store %arg2[%c0_5, %c0_6, %c0_7], %3 {strides = array<i32>} : memref<2x17x64xf32, #tpu.memory_space<vmem>>, vector<2x17x64xf32>,
    return
  }
}

</mosaic_0001>

<bundles_post_ra>
// kernel: tpu_custom_call.1
= control target key start
LH: loop header
LB: loop body
LE: loop exit
PB: predicated region body
PF: predicated region fallthrough
CT: control target
= control target key end

     0   :  { %vm27_vm0 = vcmask 523264   ;;  %vm30_vm1 = vcmask 516096   ;;  %s98_s0 = inlined_call_operand.vmem [shape: f32[2,17,64], index: 0, kind: input, shape index: {}]   ;;  %s99_s1 = inlined_call_operand.vmem [shape: f32[1,1,64], index: 1, kind: input, shape index: {}]   ;;  %s100_s2 = inlined_call_operand.vmem [shape: f32[2,17,64], index: 2, kind: output, shape index: {}]  }
   0x1   :  { %v11_v0 = vld [vmem:[%s98_s0] sm:$0xff]  ;;  %v12_v2 = vld [vmem:[%s98_s0 + $0x8] sm:$0xff]  ;;  %v13_v3 = vld [vmem:[%s98_s0 + $0x10] sm:$0x1] }
   0x2   :  { %v39_v1 = vld [vmem:[%s99_s1] ss:$0 sm:$0xff]  ;;  %v14_v4 = vld [vmem:[%s98_s0 + $0x18] sm:$0xff]  ;;  %v16_v9 = vld [vmem:[%s98_s0 + $0x28] sm:$0x1] }
   0x3   :  { %v21_v5 = vmul.f32 %v39_v1, %v11_v0  ;;  %v22_v6 = vmul.f32 %v39_v1, %v12_v2  ;;  %v23_v7 = vmul.f32 %v39_v1, %v13_v3  ;;  %v15_v8 = vld [vmem:[%s98_s0 + $0x20] sm:$0xff]  ;;  %v24_v10 = vmul.f32 %v39_v1, %v14_v4 }
   0x4   :  { %v25_v11 = vmul.f32 %v39_v1, %v15_v8  ;;  %v26_v12 = vmul.f32 %v39_v1, %v16_v9 }
   0x5   :  { %28 = vst.msk [vmem:[%s100_s2] sm:$0xff] %vm27_vm0, %v21_v5 }
   0x6   :  { %29 = vst.msk [vmem:[%s100_s2 + $0x8] sm:$0xff] %vm27_vm0, %v22_v6 }
   0x7   :  { %31 = vst.msk [vmem:[%s100_s2 + $0x10] sm:$0x1] %vm30_vm1, %v23_v7 }
   0x8   :  { %32 = vst.msk [vmem:[%s100_s2 + $0x18] sm:$0xff] %vm27_vm0, %v24_v10 }
   0x9   :  { %33 = vst.msk [vmem:[%s100_s2 + $0x20] sm:$0xff] %vm27_vm0, %v25_v11 }
   0xa   :  { %34 = vst.msk [vmem:[%s100_s2 + $0x28] sm:$0x1] %vm30_vm1, %v26_v12 }

</bundles_post_ra>
